<compile_context>
chip_gen: v7x
topology: tpu7x:2x2x1
jax: 0.10.0
libtpu: 0.0.40
codegen_flags: <defaults>
</compile_context>

<pallas_src>
import functools

import jax
import jax.numpy as jnp
from jax import lax
from jax.experimental import pallas as pl
from jax.experimental.pallas import tpu as pltpu

RANDOM_NUM_SAMPLE = 48          # hard-coded `patchmatch_num_sample = 48` in torch code

_TILE_BYTES_BUDGET = 8 * 1024 * 1024    # per f32 output block (double-buffered by Pallas)
_VMEM_LIMIT = 48 * 1024 * 1024          # fits every generation (v7x has 64 MiB physical)
_PALLAS_MIN_ELEMS = 1 << 16             # below this, plain XLA elementwise is as fast


def _round_up(x, m):
    return (x + m - 1) // m * m


def _choose_tiling(hw, num_sample, batch):
    """Pick (tile, hw_pad, num_tiles) for the flattened spatial axis.

    Preference order:
      1. One full-extent block (no padding, no post-call slice) when the
         whole row fits the byte budget.
      2. A 128-multiple tile that divides round_up(hw, 128) exactly, so the
         only padding is the <=127-lane tail.
      3. Fallback: budget-sized tile with a padded tail (only when the
         divisor structure of round_up(hw,128)/128 is hostile).
    """
    bytes_full = hw * num_sample * 4
    min_tiles = max(1, pl.cdiv(bytes_full, _TILE_BYTES_BUDGET))
    if batch * min_tiles < 2 and hw > 1024:
        min_tiles = 2                    # keep both v7x TensorCores busy
    if min_tiles == 1:
        return hw, hw, 1                 # full-extent block

    hw128 = _round_up(hw, 128)
    n_units = hw128 // 128               # number of 128-lane units
    target_units = max(1, n_units // min_tiles)
    best = 1
    for d in range(1, n_units + 1):
        if n_units % d == 0 and d <= target_units:
            best = d
    if best * 4 >= target_units:         # divisor tiling close enough to target
        tile = best * 128
        return tile, hw128, hw128 // tile
    tile = target_units * 128            # fallback: padded tail + post-slice
    hw_pad = _round_up(hw, tile)
    return tile, hw_pad, hw_pad // tile


# ----------------------------- kernels ------------------------------------ #

def _random_init_kernel(min_ref, max_ref, rand_ref, out_ref, *, num_sample):
    """random_initialization=True branch."""
    b = pl.program_id(0)
    inv_min = 1.0 / min_ref[b]                     # scalars prefetched into SMEM
    inv_max = 1.0 / max_ref[b]
    scale = (inv_min - inv_max) * (1.0 / num_sample)
    # Hoisted per-sample constants: (N, 1) bias instead of a full-tile iota.
    offs = lax.broadcasted_iota(jnp.int32, (num_sample, 1), 0).astype(jnp.float32)
    bias = inv_max + offs * scale                  # (N, 1)

    ds = rand_ref[0] * scale + bias                # (N, TILE)
    out_ref[0] = 1.0 / ds                          # exact reciprocal (matches ref)


def _perturb_kernel(min_ref, max_ref, depth_ref, out_ref, *,
                    num_sample, depth_interval_scale):
    """patchmatch_num_sample > 1 (local perturbation) branch."""
    b = pl.program_id(0)
    inv_min = 1.0 / min_ref[b]
    inv_max = 1.0 / max_ref[b]
    interval = (inv_min - inv_max) * depth_interval_scale

    start = float((-num_sample) // 2)              # matches torch.arange(-N // 2, N // 2)
    offs = lax.broadcasted_iota(jnp.int32, (num_sample, 1), 0).astype(jnp.float32) + start
    bias = interval * offs                         # (N, 1)

    inv_depth = 1.0 / depth_ref[0]                 # (1, TILE)
    ds = inv_depth + bias                          # (N, TILE)
    ds = jnp.clip(ds, inv_max, inv_min)            # clamp(min=1/max, max=1/min)
    out_ref[0] = 1.0 / ds


# ----------------------------- wrapper ------------------------------------ #

def depth_initialization(random_initialization, min_depth, max_depth, height,
                         width, depth_interval_scale, depth=None,
                         patchmatch_num_sample=1, rng_key=None, use_pallas=None):
    batch = int(min_depth.shape[0])
    hw = height * width
    min_depth = jnp.asarray(min_depth, jnp.float32).reshape(batch)
    max_depth = jnp.asarray(max_depth, jnp.float32).reshape(batch)

    # ---------------- random initialization branch ---------------- #
    if random_initialization:
        num_sample = RANDOM_NUM_SAMPLE
        if rng_key is None:
            rng_key = jax.random.PRNGKey(0)
        if use_pallas is None:
            use_pallas = hw * num_sample >= _PALLAS_MIN_ELEMS
        if not use_pallas:
            rand = jax.random.uniform(rng_key, (batch, num_sample, hw),
                                      dtype=jnp.float32)
            return _ref_random(min_depth, max_depth, rand, height, width)

        tile, hw_pad, num_tiles = _choose_tiling(hw, num_sample, batch)
        # TODO(synk): torch.rand has no bit-identical JAX equivalent; uniform
        # noise is generated host-side with jax.random (tiling-independent).
        rand = jax.random.uniform(rng_key, (batch, num_sample, hw_pad),
                                  dtype=jnp.float32)

        kernel = functools.partial(_random_init_kernel, num_sample=num_sample)
        out = pl.pallas_call(
            kernel,
            out_shape=jax.ShapeDtypeStruct((batch, num_sample, hw_pad),
                                           jnp.float32),
            grid_spec=pltpu.PrefetchScalarGridSpec(
                num_scalar_prefetch=2,          # min_depth, max_depth -> SMEM
                grid=(batch, num_tiles),
                in_specs=[
                    pl.BlockSpec((1, num_sample, tile),
                                 lambda b, t, mn, mx: (b, 0, t)),   # rand
                ],
                out_specs=pl.BlockSpec((1, num_sample, tile),
                                       lambda b, t, mn, mx: (b, 0, t))),
            compiler_params=pltpu.CompilerParams(
                dimension_semantics=("parallel", "parallel"),
                vmem_limit_bytes=_VMEM_LIMIT),
        )(min_depth, max_depth, rand)
        if hw_pad != hw:
            out = out[:, :, :hw]
        return out.reshape(batch, num_sample, height, width)

    # ---------------- pass-through branch ---------------- #
    if patchmatch_num_sample == 1:
        # `.detach()` -> stop_gradient; pure pass-through, nothing to kernelize.
        return lax.stop_gradient(depth)

    # ---------------- local perturbation branch ---------------- #
    num_sample = int(patchmatch_num_sample)
    depth = lax.stop_gradient(depth)
    if use_pallas is None:
        use_pallas = hw * num_sample >= _PALLAS_MIN_ELEMS
    if not use_pallas:
        return _ref_perturb(min_depth, max_depth, depth.astype(jnp.float32),
                            num_sample, float(depth_interval_scale))

    tile, hw_pad, num_tiles = _choose_tiling(hw, num_sample, batch)
    depth_flat = depth.astype(jnp.float32).reshape(batch, 1, hw)
    if hw_pad != hw:
        depth_flat = jnp.pad(depth_flat, ((0, 0), (0, 0), (0, hw_pad - hw)),
                             constant_values=1.0)

    kernel = functools.partial(_perturb_kernel, num_sample=num_sample,
                               depth_interval_scale=float(depth_interval_scale))
    out = pl.pallas_call(
        kernel,
        out_shape=jax.ShapeDtypeStruct((batch, num_sample, hw_pad), jnp.float32),
        grid_spec=pltpu.PrefetchScalarGridSpec(
            num_scalar_prefetch=2,              # min_depth, max_depth -> SMEM
            grid=(batch, num_tiles),
            in_specs=[
                pl.BlockSpec((1, 1, tile),
                             lambda b, t, mn, mx: (b, 0, t)),       # depth
            ],
            out_specs=pl.BlockSpec((1, num_sample, tile),
                                   lambda b, t, mn, mx: (b, 0, t))),
        compiler_params=pltpu.CompilerParams(
            dimension_semantics=("parallel", "parallel"),
            vmem_limit_bytes=_VMEM_LIMIT),
    )(min_depth, max_depth, depth_flat)
    if hw_pad != hw:
        out = out[:, :, :hw]
    return out.reshape(batch, num_sample, height, width)


# ------------------------- pure-JAX references ----------------------------- #

def _ref_random(min_depth, max_depth, rand, height, width):
    b, n, hw = rand.shape
    inv_min = (1.0 / min_depth).reshape(b, 1, 1)
    inv_max = (1.0 / max_depth).reshape(b, 1, 1)
    offs = jnp.arange(n, dtype=jnp.float32).reshape(1, n, 1)
    ds = rand + offs
    ds = inv_max + ds / n * (inv_min - inv_max)
    return (1.0 / ds).reshape(b, n, height, width)


def _ref_perturb(min_depth, max_depth, depth, num_sample, scale):
    b = min_depth.shape[0]
    inv_min = (1.0 / min_depth).reshape(b, 1, 1, 1)
    inv_max = (1.0 / max_depth).reshape(b, 1, 1, 1)
    start = (-num_sample) // 2
    offs = jnp.arange(start, num_sample // 2, dtype=jnp.float32).reshape(
        1, num_sample, 1, 1)
    interval = (inv_min - inv_max) * scale
    ds = 1.0 / depth + interval * offs
    ds = jnp.clip(ds, inv_max, inv_min)
    return 1.0 / ds


# --------------------------------- main ------------------------------------ #

if __name__ == "__main__":
    key = jax.random.PRNGKey(0)
    k_depth, k_rand, k_depth2 = jax.random.split(key, 3)

    batch, height, width = 2, 16, 16
    min_depth = jnp.array([0.5, 0.4], dtype=jnp.float32)
    max_depth = jnp.array([10.0, 8.0], dtype=jnp.float32)
    depth = jax.random.uniform(k_depth, (batch, 1, height, width),
                               dtype=jnp.float32, minval=1.0, maxval=5.0)
    depth_interval_scale = 0.025

    # Branch 1: random initialization (48 samples).
    out_rand = depth_initialization(True, min_depth, max_depth, height, width,
                                    depth_interval_scale, rng_key=k_rand,
                                    use_pallas=True)
    out_rand = jax.block_until_ready(out_rand)
    assert out_rand.shape == (batch, RANDOM_NUM_SAMPLE, height, width)
    assert bool(jnp.all(jnp.isfinite(out_rand)))
    lo = min_depth.reshape(batch, 1, 1, 1) * (1.0 - 1e-5)
    hi = max_depth.reshape(batch, 1, 1, 1) * (1.0 + 1e-5)
    assert bool(jnp.all((out_rand >= lo) & (out_rand <= hi)))
    # Depth must (weakly) decrease with sample index (disjoint inverse-depth bins).
    assert bool(jnp.all(out_rand[:, :-1] >= out_rand[:, 1:] * (1.0 - 1e-6)))

    # Branch 2: patchmatch_num_sample == 1 (pass-through).
    out_pass = depth_initialization(False, min_depth, max_depth, height, width,
                                    depth_interval_scale, depth=depth,
                                    patchmatch_num_sample=1)
    out_pass = jax.block_until_ready(out_pass)
    assert jnp.allclose(out_pass, depth)

    # Branch 3: local perturbation (patchmatch_num_sample = 8).
    num_sample = 8
    out_pert = depth_initialization(False, min_depth, max_depth, height, width,
                                    depth_interval_scale, depth=depth,
                                    patchmatch_num_sample=num_sample,
                                    use_pallas=True)
    out_pert = jax.block_until_ready(out_pert)
    ref_pert = _ref_perturb(min_depth, max_depth, depth, num_sample,
                            depth_interval_scale)
    assert out_pert.shape == (batch, num_sample, height, width)
    assert jnp.allclose(out_pert, ref_pert, rtol=1e-4, atol=1e-6)

    # Branch 3 again with a non-128-multiple spatial size (full-extent block).
    h2, w2 = 9, 14
    depth2 = jax.random.uniform(k_depth2, (batch, 1, h2, w2), dtype=jnp.float32,
                                minval=1.0, maxval=5.0)
    out_pert2 = depth_initialization(False, min_depth, max_depth, h2, w2,
                                     depth_interval_scale, depth=depth2,
                                     patchmatch_num_sample=num_sample,
                                     use_pallas=True)
    out_pert2 = jax.block_until_ready(out_pert2)
    ref_pert2 = _ref_perturb(min_depth, max_depth, depth2, num_sample,
                             depth_interval_scale)
    assert out_pert2.shape == (batch, num_sample, h2, w2)
    assert jnp.allclose(out_pert2, ref_pert2, rtol=1e-4, atol=1e-6)

    print("KERNEL_OK")
</pallas_src>

<mosaic_0001>
module attributes {stable_mosaic.version = 11 : i64} {
  func.func @_random_init_kernel(%arg0: i32, %arg1: i32, %arg2: memref<2xf32, #tpu.memory_space<smem>>, %arg3: memref<2xf32, #tpu.memory_space<smem>>, %arg4: memref<1x48x256xf32, #tpu.memory_space<vmem>>, %arg5: memref<1x48x256xf32, #tpu.memory_space<vmem>>) attributes {dimension_semantics = [#tpu.dimension_semantics<parallel>, #tpu.dimension_semantics<parallel>], iteration_bounds = array<i64: 2, 1>, scalar_prefetch = 2 : i64, scratch_operands = 0 : i64, tpu.core_type = #tpu.core_type<tc>, window_params = [{transform_indices = @transform_0, window_bounds = array<i64: 1, 48, 256>}, {transform_indices = @transform_1, window_bounds = array<i64: 1, 48, 256>}]} {
    %0 = arith.index_cast %arg0 : i32 to index
    %1 = memref.load %arg2[%0] : memref<2xf32, #tpu.memory_space<smem>>
    %cst = arith.constant 1.000000e+00 : f32
    %2 = arith.divf %cst, %1 : f32
    %3 = arith.index_cast %arg0 : i32 to index
    %4 = memref.load %arg3[%3] : memref<2xf32, #tpu.memory_space<smem>>
    %cst_0 = arith.constant 1.000000e+00 : f32
    %5 = arith.divf %cst_0, %4 : f32
    %6 = arith.subf %2, %5 : f32
    %cst_1 = arith.constant 0.020833334 : f32
    %7 = arith.mulf %6, %cst_1 : f32
    %8 = tpu.iota {dimensions = array<i32: 0>} : vector<48x1xi32>
    %9 = arith.sitofp %8 : vector<48x1xi32> to vector<48x1xf32>
    %10 = vector.broadcast %7 : f32 to vector<48x1xf32>
    %11 = arith.mulf %9, %10 : vector<48x1xf32>
    %12 = vector.broadcast %5 : f32 to vector<48x1xf32>
    %13 = arith.addf %12, %11 : vector<48x1xf32>
    %c0 = arith.constant 0 : index
    %c0_2 = arith.constant 0 : index
    %c0_3 = arith.constant 0 : index
    %14 = vector.load %arg4[%c0, %c0_2, %c0_3] : memref<1x48x256xf32, #tpu.memory_space<vmem>>, vector<1x48x256xf32>
    %15 = vector.shape_cast %14 : vector<1x48x256xf32> to vector<48x256xf32>
    %16 = vector.broadcast %7 : f32 to vector<48x256xf32>
    %17 = arith.mulf %15, %16 : vector<48x256xf32>
    %18 = vector.broadcast %13 : vector<48x1xf32> to vector<48x256xf32>
    %19 = arith.addf %17, %18 : vector<48x256xf32>
    %cst_4 = arith.constant 1.000000e+00 : f32
    %20 = vector.broadcast %cst_4 : f32 to vector<48x256xf32>
    %21 = arith.divf %20, %19 : vector<48x256xf32>
    %c0_5 = arith.constant 0 : index
    %c0_6 = arith.constant 0 : index
    %c0_7 = arith.constant 0 : index
    %22 = vector.load %arg5[%c0_5, %c0_6, %c0_7] : memref<1x48x256xf32, #tpu.memory_space<vmem>>, vector<1x48x256xf32>
    %23 = vector.shape_cast %22 : vector<1x48x256xf32> to vector<48x256xf32>
    %24 = vector.shape_cast %21 : vector<48x256xf32> to vector<1x48x256xf32>
    tpu.vector_store %arg5[%c0_5, %c0_6, %c0_7], %24 {strides = array<i32>} : memref<1x48x256xf32, #tpu.memory_space<vmem>>, vector<1x48x256xf32>,
    return
  }
  func.func @transform_0(%arg0: i32, %arg1: i32, %arg2: memref<2xf32, #tpu.memory_space<smem>>, %arg3: memref<2xf32, #tpu.memory_space<smem>>) -> (i32, i32, i32) {
    %c0_i32 = arith.constant 0 : i32
    %c0_i32_0 = arith.constant 0 : i32
    return %arg0, %c0_i32, %arg1 : i32, i32, i32
  }
  func.func @transform_1(%arg0: i32, %arg1: i32, %arg2: memref<2xf32, #tpu.memory_space<smem>>, %arg3: memref<2xf32, #tpu.memory_space<smem>>) -> (i32, i32, i32) {
    %c0_i32 = arith.constant 0 : i32
    %c0_i32_0 = arith.constant 0 : i32
    return %arg0, %c0_i32, %arg1 : i32, i32, i32
  }
}

</mosaic_0001>

<bundles_post_ra>
// kernel: tpu_custom_call.1
= control target key start
LH: loop header
LB: loop body
LE: loop exit
PB: predicated region body
PF: predicated region fallthrough
CT: control target
= control target key end

     0   :  { %s866_s0 = inlined_call_operand.hbm [shape: f32[2], index: 0, kind: input, shape index: {}]   ;;  %s867_s2 = inlined_call_operand.hbm [shape: f32[2,48,256], index: 2, kind: input, shape index: {}]   ;;  %s868_s3 = inlined_call_operand.hbm [shape: f32[2,48,256], index: 3, kind: output, shape index: {}]   ;;  %s869_s1 = inlined_call_operand.vmem [shape: f32[2], index: 1, kind: input, shape index: {}]  }
   0x1   :  { %s490_s14 = scalar_lea.hbm %s866_s0, 16 }
   0x2   :  { %p491_p0 = scmp.ne.s32.totalorder %s866_s0, %s490_s14  ;;  %p494_p1 = scmp.lt.u32.totalorder %s490_s14, %s866_s0 }
   0x4   :  { %p496_p2 = pnand %p494_p1, %p491_p0 }
   0x6   :  { %499 = shalt.err (!%p496_p2)  }
   0x7   :  { %s628_s19 = smov [#allocation3]   ;;  %s10_s24 = sshll.u32 %s869_s1, 4  ;;  %s11_s24 = int_to_ptr.vmem [resolvable:$true] %s10_s24 }
   0x8   :  { %9 = dma.hbm_to_smem %s866_s0, 16, %s628_s19, [#allocation2] }
   0x9   :  { %s500_s25 = scalar_lea.vmem %s11_s24, 16  ;;  %p505_p4 = scmp.lt.s32.totalorder %s11_s24, %s11_s24 }
   0xa   :  { %p501_p3 = scmp.ne.s32.totalorder %s11_s24, %s500_s25  ;;  %p506_p5 = scmp.lt.s32.totalorder %s500_s25, %s500_s25 }
   0xc   :  { %p507_p6 = por %p506_p5, %p505_p4 }
   0xe   :  { %p508_p7 = pnand %p507_p6, %p501_p3 }
  0x10   :  { %511 = shalt.err (!%p508_p7)  }
  0x11   :  { %s629_s26 = smov [#allocation4]  }
  0x12   :  { %13 = dma.vmem_to_smem %s11_s24, 16, %s629_s26, [#allocation2] }
  0x13   :  { %594 = dma.done.wait [#allocation2], 32 }
  0x14   :  { %595 = vsyncadd [#allocation2], 4294967264 }
  0x15   :  { %15 = sfence }
  0x16   :  { %16 = vsyncpa [#allocation6], 0 }
  0x17   :  { %18 = vsyncpa [#allocation6 + $0x1], 0 }
  0x18   :  { %19 = vsyncpa [#allocation7], 0 }
  0x19   :  { %21 = vsyncpa [#allocation7 + $0x1], 0  ;;  %s671_s0 = smov 0   ;;  %s673_s1 = smov 0  }
  0x1a   :  { %s675_s27 = smov 0   ;;  %s677_s28 = smov 0  }
  0x1b   :  { %s679_s29 = smov 0   ;;  %s681_s30 = smov 0  }
  0x1c LB: > { %s377_s4 = sadd.s32 4294967295, %s626_s30   ;;  %s378_s5 = sadd.s32 4294967294, %s626_s30   ;;  %s626_s30 = sphi %s681_s30, %s27_s30   ;;  %s622_s29 = sphi %s679_s29, %s884_s29   ;;  %s618_s28 = sphi %s677_s28, %s883_s28   ;;  %s614_s27 = sphi %s675_s27, %s882_s27   ;;  %s610_s1 = sphi %s673_s1, %s881_s1   ;;  %s606_s0 = sphi %s671_s0, %s880_s0  }
  0x1d   : > { %s39_s6 = sadd.s32 1, %s622_s29  ;;  %s48_s7 = sadd.s32 1, %s614_s27 }
  0x1e   : > { %p41_p8 = scmp.ge.s32.totalorder %s39_s6, 2  ;;  %p55_p9 = scmp.ne.s32.totalorder %s614_s27, %s610_s1 }
  0x1f   : > { %p56_p10 = scmp.eq.s32.totalorder %s626_s30, 0  ;;  %p61_p11 = scmp.ne.s32.totalorder %s610_s1, %s606_s0 }
  0x20   : > { %s886_s6 = smov (%p41_p8, %s39_s6), 0  ;;  %p62_p13 = scmp.eq.s32.totalorder %s377_s4, 0 }
  0x21   : > { %p712_p12 = por %p56_p10, %p55_p9  ;;  %s43_s9 = ssub.s32 %s622_s29, %s886_s6 }
  0x22   : > { %p87_p0 = scmp.eq.s32.totalorder %s377_s4, 1  ;;  %p46_p1 = scmp.eq.s32.totalorder %s43_s9, 0 }
  0x23   : > { %p718_p2 = por %p62_p13, %p61_p11  ;;  %p93_p4 = scmp.eq.s32.totalorder %s378_s5, 1 }
  0x24   : > { %p722_p3 = por %p87_p0, %p55_p9  ;;  %p406_p7 = scmp.lt.s32.totalorder %s626_s30, 2 }
  0x25   : > { %s727_s12 = scalar_select %p46_p1, %s614_s27, %s48_s7  }
  0x26   : > { %s873_s11 = scalar_select %p722_p3, 1, 0 }
  0x27   : > { %p729_p5 = por %p93_p4, %p61_p11  ;;  %s113_s14 = sand.u32 1, %s614_s27  }
  0x28   : > { %s386_s15 = smul.u32 96, %s113_s14  ;;  %p739_p8 = pnand %p406_p7, %p712_p12 }
  0x29   : > { %s874_s13 = scalar_select %p729_p5, 1, 0 }
  0x2a   : > { %s387_s16 = smul.u32 1536, %s622_s29  ;;  %s117_s21 = scalar_lea.vmem [#allocation5], %s386_s15 }
  0x2b   : > { %s126_s22 = sshll.u32 %s117_s21, 4  ;;  %s751_s23 = scalar_lea.sflag [#allocation6], %s113_s14  ;;  %s748_s22 = int_to_ptr.vmem [resolvable:$true] %s126_s22 }
  0x2c   : > { %s746_s20 = scalar_lea.hbm %s867_s2, %s387_s16  ;;  %p514_p11 = pneg %p739_p8 }
  0x2d   : > { %s512_s24 = scalar_lea.hbm %s746_s20, 1536  ;;  %s517_s4 = scalar_lea.hbm %s867_s2, 3072 }
  0x2e   : > { %p513_p10 = scmp.ne.s32.totalorder %s746_s20, %s512_s24  ;;  %p518_p0 = scmp.lt.u32.totalorder %s746_s20, %s867_s2 }
  0x2f   : > { %p519_p1 = scmp.lt.u32.totalorder %s517_s4, %s512_s24  ;;  %p521_p7 = scmp.lt.u32.totalorder %s512_s24, %s746_s20 }
  0x30   : > { %p515_p12 = pnand %p514_p11, %p513_p10 }
  0x31   : > { %p520_p4 = por %p519_p1, %p518_p0 }
  0x32   : > { %p516_p13 = pneg %p515_p12 }
  0x33   : > { %p522_p6 = por %p521_p7, %p520_p4 }
  0x35   : > { %p523_p9 = pnand %p522_p6, %p516_p13 }
  0x37   : > { %526 = shalt.err (!%p523_p9)
}
  0x38   : > { %s527_s8 = scalar_lea.vmem %s748_s22, 1536  ;;  %s630_s9 = smov [#allocation5]  }
  0x39   : > { %p528_p10 = scmp.ne.s32.totalorder %s748_s22, %s527_s8  ;;  %s532_s14 = sshll.u32 %s630_s9, 4  ;;  %s533_s14 = int_to_ptr.vmem [resolvable:$false] %s532_s14 }
  0x3a   : > { %s534_s15 = scalar_lea.vmem %s533_s14, 3072  ;;  %p535_p3 = scmp.lt.s32.totalorder %s748_s22, %s533_s14 }
  0x3b   : > { %p530_p12 = pnand %p528_p10, %p514_p11  ;;  %p536_p0 = scmp.lt.s32.totalorder %s534_s15, %s527_s8 }
  0x3d   : > { %p531_p5 = pneg %p530_p12  ;;  %p537_p1 = por %p536_p0, %p535_p3 }
  0x3f   : > { %p538_p4 = pnand %p537_p1, %p531_p5 }
  0x41   : > { %541 = shalt.err (!%p538_p4)
}
  0x42   : > { %s631_s16 = smov 256   ;;  %s632_s18 = smov 16  }
  0x43   : > { %401 = dma.hbm_to_vmem [thread:$0]  (!%p739_p8), %s746_s20, 1536, %s748_s22, %s751_s23, %s631_s16, %s631_s16, %s632_s18  }
  0x44   : > { %p134_p6 = scmp.lt.s32.totalorder %s626_s30, 3  ;;  %p876_p9 = scmp.ge.s32.totalorder %s626_s30, 1 }
  0x46   : > { %p135_p11 = pnand %p876_p9, %p134_p6 }
  0x47   : > { %s783_s19 = sand.u32 (!%p135_p11), 1, %s610_s1  }
  0x48   : > { %138 = sbr.rel (%p135_p11) target bundleno = 197 (0xc5), region = 24  ;;  %s141_s24 = scalar_lea.sflag (!%p135_p11), [#allocation6], %s783_s19 }
  0x49   : > { %s388_s21 = smul.u32 (!%p135_p11), 96, %s783_s19 }
  0x4b   : > { %s789_s25 = scalar_lea.vmem (!%p135_p11), [#allocation5], %s388_s21 }
  0x4f   : > { %597 = dma.done.wait (%p718_p2), %s141_s24, 1536  }
  0x50   : > { %599 = vsyncadd (%p718_p2), %s141_s24, 4294965760  ;;  %s165_s17 = sld [smem:[#allocation3 + %s618_s28]]  ;;  %v175_v4 = vlaneseq  ;;  %v202_v21 = vld [vmem:[%s789_s25] sm:$0xff]  ;;  %v203_v22 = vld [vmem:[%s789_s25 + $0x8] sm:$0xff]  ;;  %s162_s4 = scalar_lea.vmem [#allocation8], %s388_s21 }
  0x51   : > { %s169_s20 = sld [smem:[#allocation4 + %s618_s28]]  ;;  %v204_v24 = vld [vmem:[%s789_s25 + $0x10] sm:$0xff]  ;;  %v205_v28 = vld [vmem:[%s789_s25 + $0x18] sm:$0xff]  ;;  %v206_v29 = vld [vmem:[%s789_s25 + $0x20] sm:$0xff]  ;;  %s393_s5 = smul.u32 1536, %s618_s28 }
  0x52   : > { %v176_v5 = vshrl.u32 %v175_v4, 7  ;;  %v207_v34 = vld [vmem:[%s789_s25 + $0x28] sm:$0xff]  ;;  %v208_v36 = vld [vmem:[%s789_s25 + $0x30] sm:$0xff]  ;;  %v209_v42 = vld [vmem:[%s789_s25 + $0x38] sm:$0xff]  ;;  %s290_s7 = sshll.u32 %s162_s4, 4  ;;  %s275_s28 = scalar_lea.sflag [#allocation7], %s783_s19  ;;  %s812_s7 = int_to_ptr.vmem [resolvable:$true] %s290_s7 }
  0x53   : > { %v210_v45 = vld [vmem:[%s789_s25 + $0x40] sm:$0xff]  ;;  %v211_v49 = vld [vmem:[%s789_s25 + $0x48] sm:$0xff]  ;;  %v212_v52 = vld [vmem:[%s789_s25 + $0x50] sm:$0xff]  ;;  %s817_s14 = scalar_lea.hbm %s868_s3, %s393_s5  ;;  %s542_s15 = scalar_lea.vmem %s812_s7, 1536 }
  0x54   : > { %v177_v6 = vadd.s32 8, %v176_v5  ;;  %v178_v7 = vadd.s32 16, %v176_v5  ;;  %v179_v8 = vadd.s32 24, %v176_v5  ;;  %v182_v9 = vcvt.s32.f32 %v176_v5  ;;  %v213_v56 = vld [vmem:[%s789_s25 + $0x58] sm:$0xff]  ;;  %p543_p2 = scmp.ne.s32.totalorder %s812_s7, %s542_s15  ;;  %p877_p3 = scmp.ne.s32.totalorder %s873_s11, 0 }
  0x55   : > { %v180_v11 = vadd.s32 32, %v176_v5  ;;  %v181_v13 = vadd.s32 40, %v176_v5  ;;  %s633_s16 = smov [#allocation8]  }
  0x56   : > { %v166_v0 = vstv %s165_s17  ;;  %v183_v10 = vcvt.s32.f32 %v177_v6  ;;  %v184_v12 = vcvt.s32.f32 %v178_v7  ;;  %v185_v14 = vcvt.s32.f32 %v179_v8  ;;  %p544_p5 = pnand %p543_p2, %p877_p3  ;;  %s546_s18 = sshll.u32 %s633_s16, 4  ;;  %s547_s18 = int_to_ptr.vmem [resolvable:$false] %s546_s18 }
  0x57   : > { %v170_v1 = vstv %s169_s20  ;;  %462 = vrcp.f32 %v166_v0  ;;  %v186_v18 = vcvt.s32.f32 %v180_v11  ;;  %v187_v25 = vcvt.s32.f32 %v181_v13  ;;  %s548_s21 = scalar_lea.vmem %s547_s18, 3072  ;;  %p549_p13 = scmp.lt.s32.totalorder %s812_s7, %s547_s18 }
  0x58   : > { %464 = vrcp.f32 %v170_v1  ;;  %p545_p8 = pneg %p544_p5  ;;  %p550_p7 = scmp.lt.s32.totalorder %s548_s21, %s542_s15 }
  0x5a   : > { %p551_p10 = por %p550_p7, %p549_p13 }
  0x5c   : > { %p552_p12 = pnand %p551_p10, %p545_p8 }
  0x61   : > { %v463_v2 = vpop.eup %462 }
  0x62   : > { %v465_v3 = vpop.eup %464  ;;  %389 = vpush %v463_v2 }
  0x63   : > { %391 = vpush %v465_v3 }
  0x93   : > { %s390_s22 = spop %389 }
  0x94   : > { %s392_s23 = spop %391 }
  0x95   : > { %s173_s10 = ssub.f32 %s390_s22, %s392_s23  ;;  %v195_v20 = vstv %s392_s23 }
  0x97   : > { %s174_s26 = smul.f32 0.020833334, %s173_s10 }
  0x99   : > { %v188_v15 = vstv %s174_s26 }
  0x9a   : > { %v189_v16 = vmul.f32 %v188_v15, %v182_v9  ;;  %v190_v17 = vmul.f32 %v188_v15, %v183_v10  ;;  %v191_v19 = vmul.f32 %v188_v15, %v184_v12  ;;  %v192_v26 = vmul.f32 %v188_v15, %v185_v14 }
  0x9b   : > { %v214_v30 = vmul.f32 %v202_v21, %v188_v15  ;;  %v215_v31 = vmul.f32 %v203_v22, %v188_v15  ;;  %v193_v32 = vmul.f32 %v188_v15, %v186_v18  ;;  %v216_v35 = vmul.f32 %v204_v24, %v188_v15 }
  0x9c   : > { %v196_v23 = vadd.f32 %v195_v20, %v189_v16  ;;  %v197_v27 = vadd.f32 %v195_v20, %v190_v17  ;;  %v198_v33 = vadd.f32 %v195_v20, %v191_v19  ;;  %v217_v37 = vmul.f32 %v205_v28, %v188_v15 }
  0x9d   : > { %v194_v40 = vmul.f32 %v188_v15, %v187_v25  ;;  %v199_v41 = vadd.f32 %v195_v20, %v192_v26  ;;  %v218_v43 = vmul.f32 %v206_v29, %v188_v15  ;;  %v219_v46 = vmul.f32 %v207_v34, %v188_v15 }
  0x9e   : > { %v226_v38 = vadd.f32 %v214_v30, %v196_v23  ;;  %v227_v39 = vadd.f32 %v215_v31, %v196_v23  ;;  %v228_v44 = vadd.f32 %v216_v35, %v197_v27  ;;  %v229_v47 = vadd.f32 %v217_v37, %v197_v27 }
  0x9f   : > { %v200_v48 = vadd.f32 %v195_v20, %v193_v32  ;;  %v220_v50 = vmul.f32 %v208_v36, %v188_v15  ;;  %v230_v51 = vadd.f32 %v218_v43, %v198_v33  ;;  %v221_v53 = vmul.f32 %v209_v42, %v188_v15 }
  0xa0   : > { %466 = vrcp.f32 %v226_v38  ;;  %v231_v54 = vadd.f32 %v219_v46, %v198_v33  ;;  %v201_v55 = vadd.f32 %v195_v20, %v194_v40  ;;  %v222_v57 = vmul.f32 %v210_v45, %v188_v15 }
  0xa1   : > { %468 = vrcp.f32 %v227_v39  ;;  %v232_v58 = vadd.f32 %v220_v50, %v199_v41  ;;  %v223_v59 = vmul.f32 %v211_v49, %v188_v15  ;;  %v233_v60 = vadd.f32 %v221_v53, %v199_v41 }
  0xa2   : > { %470 = vrcp.f32 %v228_v44  ;;  %v224_v61 = vmul.f32 %v212_v52, %v188_v15  ;;  %v234_v62 = vadd.f32 %v222_v57, %v200_v48  ;;  %v225_v63 = vmul.f32 %v213_v56, %v188_v15 }
  0xa3   : > { %472 = vrcp.f32 %v229_v47  ;;  %v235_v0 = vadd.f32 %v223_v59, %v200_v48 }
  0xa4   : > { %474 = vrcp.f32 %v230_v51  ;;  %v236_v1 = vadd.f32 %v224_v61, %v201_v55  ;;  %v237_v2 = vadd.f32 %v225_v63, %v201_v55 }
  0xa5   : > { %476 = vrcp.f32 %v231_v54 }
  0xa6   : > { %478 = vrcp.f32 %v232_v58 }
  0xa7   : > { %480 = vrcp.f32 %v233_v60 }
  0xa8   : > { %482 = vrcp.f32 %v234_v62 }
  0xa9   : > { %484 = vrcp.f32 %v235_v0 }
  0xaa   : > { %v467_v3 = vpop.eup %466  ;;  %486 = vrcp.f32 %v236_v1 }
  0xab   : > { %v469_v4 = vpop.eup %468  ;;  %488 = vrcp.f32 %v237_v2  ;;  %262 = vst [vmem:[%s162_s4] sm:$0xff] %v467_v3 }
  0xac   : > { %v471_v5 = vpop.eup %470  ;;  %263 = vst [vmem:[%s162_s4 + $0x8] sm:$0xff] %v469_v4 }
  0xad   : > { %v473_v6 = vpop.eup %472  ;;  %264 = vst [vmem:[%s162_s4 + $0x10] sm:$0xff] %v471_v5 }
  0xae   : > { %v475_v7 = vpop.eup %474  ;;  %265 = vst [vmem:[%s162_s4 + $0x18] sm:$0xff] %v473_v6 }
  0xaf   : > { %v477_v8 = vpop.eup %476  ;;  %266 = vst [vmem:[%s162_s4 + $0x20] sm:$0xff] %v475_v7 }
  0xb0   : > { %v479_v9 = vpop.eup %478  ;;  %267 = vst [vmem:[%s162_s4 + $0x28] sm:$0xff] %v477_v8 }
  0xb1   : > { %v481_v10 = vpop.eup %480  ;;  %268 = vst [vmem:[%s162_s4 + $0x30] sm:$0xff] %v479_v9 }
  0xb2   : > { %v483_v11 = vpop.eup %482  ;;  %269 = vst [vmem:[%s162_s4 + $0x38] sm:$0xff] %v481_v10 }
  0xb3   : > { %v485_v12 = vpop.eup %484  ;;  %270 = vst [vmem:[%s162_s4 + $0x40] sm:$0xff] %v483_v11 }
  0xb4   : > { %v487_v13 = vpop.eup %486  ;;  %271 = vst [vmem:[%s162_s4 + $0x48] sm:$0xff] %v485_v12 }
  0xb5   : > { %v489_v14 = vpop.eup %488  ;;  %272 = vst [vmem:[%s162_s4 + $0x50] sm:$0xff] %v487_v13 }
  0xb6   : > { %273 = vst [vmem:[%s162_s4 + $0x58] sm:$0xff] %v489_v14 }
  0xb7   : > { %555 = shalt.err (!%p552_p12)
}
  0xb8   : > { %s556_s24 = scalar_lea.hbm %s817_s14, 1536  ;;  %s560_s20 = scalar_lea.hbm %s868_s3, 3072 }
  0xb9   : > { %p557_p0 = scmp.ne.s32.totalorder %s817_s14, %s556_s24  ;;  %p561_p6 = scmp.lt.u32.totalorder %s817_s14, %s868_s3 }
  0xba   : > { %p562_p9 = scmp.lt.u32.totalorder %s560_s20, %s556_s24  ;;  %p564_p2 = scmp.lt.u32.totalorder %s556_s24, %s817_s14 }
  0xbb   : > { %p558_p1 = pnand %p557_p0, %p877_p3 }
  0xbc   : > { %p563_p11 = por %p562_p9, %p561_p6 }
  0xbd   : > { %p559_p4 = pneg %p558_p1 }
  0xbe   : > { %p565_p5 = por %p564_p2, %p563_p11 }
  0xc0   : > { %p566_p8 = pnand %p565_p5, %p559_p4 }
  0xc2   : > { %569 = shalt.err (!%p566_p8)
}
  0xc3   : > { %s634_s10 = smov 256   ;;  %s635_s26 = smov 16  }
  0xc4   : > { %396 = dma.vmem_to_hbm [thread:$0]  (%p877_p3), %s812_s7, 1536, %s817_s14, %s275_s28, %s634_s10, %s634_s10, %s635_s26  }
  0xc5 PF: > { %s305_s4 = sand.u32 1, %s606_s0   ;;  %p878_p13 = scmp.ne.s32.totalorder %s874_s13, 0 }
  0xc6   : > { %p879_p7 = scmp.ge.s32.totalorder %s626_s30, 2  ;;  %s306_s5 = scalar_lea.sflag [#allocation7], %s305_s4 }
  0xc8   : > { %p403_p10 = pnand %p879_p7, %p878_p13 }
  0xca   : > { %601 = dma.done.wait (!%p403_p10), %s306_s5, 1536  }
  0xcb   : > { %603 = vsyncadd (!%p403_p10), %s306_s5, 4294965760  ;;  %s27_s30 = sadd.s32 1, %s626_s30   ;;  %s880_s0 = smov %s610_s1 }
  0xcc   : > { %p24_p12 = scmp.ge.s32.totalorder %s27_s30, 4   ;;  %s881_s1 = smov %s614_s27 }
  0xcd   : > { %s882_s27 = smov %s727_s12  ;;  %s883_s28 = smov %s622_s29 }
  0xce   : > { %s884_s29 = smov %s886_s6  ;;  %26 = sbr.rel (!%p24_p12) target bundleno = 28 (0x1c), region = 69 }
  0xd5   :  { %311 = vsyncpa [#allocation6], 1 }
  0xd6   :  { %313 = vsyncpa [#allocation6 + $0x1], 1 }
  0xd7   :  { %314 = vsyncpa [#allocation7], 1 }
  0xd8   :  { %316 = vsyncpa [#allocation7 + $0x1], 1 }

</bundles_post_ra>
